<compile_context>
chip_gen: v5e
topology: v5e:2x2
jax: 0.10.0
libtpu: 0.0.40
codegen_flags: <defaults>
</compile_context>

<pallas_src>
import math

import jax
import jax.numpy as jnp
from jax import lax
from jax.experimental import pallas as pl
from jax.experimental.pallas import tpu as pltpu

_VMEM_LIMIT = 48 * 1024 * 1024  # safe on v5e/v6e (128 MiB) and v7x (64 MiB)


# ---------------------------------------------------------------------------
# Kernel 1: tiled dense (Linear) layer  --  out = x @ w + b
# ---------------------------------------------------------------------------
def _linear_kernel(x_ref, w_ref, b_ref, o_ref, acc_ref):
    kk = pl.program_id(2)

    @pl.when(kk == 0)
    def _init():
        acc_ref[...] = jnp.zeros_like(acc_ref)

    # Contraction dim is host-padded with zeros -> no masking in the steady state.
    acc_ref[...] += jnp.dot(x_ref[...], w_ref[...],
                            preferred_element_type=jnp.float32)

    @pl.when(kk == pl.num_programs(2) - 1)
    def _finish():
        o_ref[...] = (acc_ref[...] + b_ref[...].astype(jnp.float32)).astype(o_ref.dtype)


def linear(x, w, b, *, tm=512, tn=512, tk=512):
    """x: (M, IN), w: (IN, OUT), b: (OUT,) -> (M, OUT)."""
    M, IN = x.shape
    OUT = w.shape[1]
    TM = min(tm, M)
    TN = min(tn, OUT)
    TK = min(tk, IN)

    # Pad the contraction dim once on the host so the K loop never masks
    # (zero rows/cols contribute nothing to the accumulation).
    if IN % TK != 0:
        in_pad = pl.cdiv(IN, TK) * TK
        x = jnp.pad(x, ((0, 0), (0, in_pad - IN)))
        w = jnp.pad(w, ((0, in_pad - IN), (0, 0)))
        IN = in_pad

    b2 = b.reshape(1, OUT)
    grid = (pl.cdiv(M, TM), pl.cdiv(OUT, TN), pl.cdiv(IN, TK))
    itemsize = x.dtype.itemsize
    cost = pl.CostEstimate(
        flops=2 * M * OUT * IN,
        transcendentals=0,
        bytes_accessed=(M * IN + IN * OUT + OUT + M * OUT) * itemsize,
    )
    return pl.pallas_call(
        _linear_kernel,
        out_shape=jax.ShapeDtypeStruct((M, OUT), x.dtype),
        grid=grid,
        in_specs=[
            pl.BlockSpec((TM, TK), lambda i, j, kk: (i, kk)),
            pl.BlockSpec((TK, TN), lambda i, j, kk: (kk, j)),
            pl.BlockSpec((1, TN), lambda i, j, kk: (0, j)),
        ],
        out_specs=pl.BlockSpec((TM, TN), lambda i, j, kk: (i, j)),
        scratch_shapes=[pltpu.VMEM((TM, TN), jnp.float32)],
        compiler_params=pltpu.CompilerParams(
            dimension_semantics=("parallel", "parallel", "arbitrary"),
            vmem_limit_bytes=_VMEM_LIMIT,
        ),
        cost_estimate=cost,
    )(x, w, b2)


# ---------------------------------------------------------------------------
# Kernel 2: flash-style multi-head attention over the packed (B, N, H*Dh) layout
#           NOTE: softmax scaling is NOT applied here; callers fold it into the
#           q projection weights.
# ---------------------------------------------------------------------------
def _make_flash_kernel(num_heads, head_dim, nk_total, tkv, needs_kv_mask):
    emb = num_heads * head_dim

    def step_body(q, k, v, m_ref, l_ref, acc_ref, kv_valid):
        """One online-softmax step. kv_valid is None (no mask) or (1, TKV) bool."""
        tq = q.shape[0]
        alphas = []
        pvs = []
        # Statically unrolled over heads (demo H=4).
        # TODO(synk): for H >= 8, switch to lax.fori_loop + a (H,TQ,Dh) pv scratch
        # to bound vreg live ranges (only 64 vregs available).
        for h in range(num_heads):
            sl = slice(h * head_dim, (h + 1) * head_dim)
            qh = q[:, sl]                             # (TQ, Dh)
            kh = k[:, sl]                             # (TKV, Dh)
            vh = v[:, sl]                             # (TKV, Dh)

            # QK^T without an explicit transpose: contract last dims.
            s = lax.dot_general(qh, kh, (((1,), (1,)), ((), ())),
                                preferred_element_type=jnp.float32)   # (TQ, TKV)
            if kv_valid is not None:
                s = jnp.where(kv_valid, s, -jnp.inf)

            m_prev = m_ref[h]                                         # (TQ, 1) f32
            m_new = jnp.maximum(m_prev, jnp.max(s, axis=-1, keepdims=True))
            alpha = jnp.exp(m_prev - m_new)
            p = jnp.exp(s - m_new)                                    # (TQ, TKV) f32
            l_ref[h] = alpha * l_ref[h] + jnp.sum(p, axis=-1, keepdims=True)
            m_ref[h] = m_new

            pv = lax.dot_general(p.astype(vh.dtype), vh, (((1,), (0,)), ((), ())),
                                 preferred_element_type=jnp.float32)  # (TQ, Dh)
            pvs.append(pv)
            alphas.append(jnp.broadcast_to(alpha, (tq, head_dim)))

        # Single lane-dense full-width accumulator update per KV step.
        alpha_full = jnp.concatenate(alphas, axis=-1)                 # (TQ, D)
        pv_full = jnp.concatenate(pvs, axis=-1)                       # (TQ, D)
        acc_ref[...] = alpha_full * acc_ref[...] + pv_full

    def kernel(q_ref, k_ref, v_ref, o_ref, m_ref, l_ref, acc_ref):
        ki = pl.program_id(2)
        last = pl.num_programs(2) - 1

        @pl.when(ki == 0)
        def _init():
            m_ref[...] = jnp.full_like(m_ref, -jnp.inf)
            l_ref[...] = jnp.zeros_like(l_ref)
            acc_ref[...] = jnp.zeros_like(acc_ref)

        q = q_ref[0]                                  # (TQ, D), resident across ki
        k = k_ref[0]                                  # (TKV, D)
        v = v_ref[0]                                  # (TKV, D)

        if needs_kv_mask:
            # Masking only pays on the last KV tile; interior steps stay clean.
            @pl.when(ki != last)
            def _clean():
                step_body(q, k, v, m_ref, l_ref, acc_ref, None)

            @pl.when(ki == last)
            def _masked():
                base = ki * tkv
                kv_ids = lax.broadcasted_iota(jnp.int32, (1, tkv), 1) + base
                kv_valid = kv_ids < nk_total                          # (1, TKV)
                # Zero OOB v rows: OOB block contents are unspecified, and
                # 0 * NaN would otherwise poison the accumulator.
                v_rows = lax.broadcasted_iota(jnp.int32, v.shape, 0) + base
                v_m = jnp.where(v_rows < nk_total, v, jnp.zeros_like(v))
                step_body(q, k, v_m, m_ref, l_ref, acc_ref, kv_valid)
        else:
            step_body(q, k, v, m_ref, l_ref, acc_ref, None)

        @pl.when(ki == last)
        def _finish():
            tq = acc_ref.shape[0]
            # Exact reciprocal (runs once per output tile over TQ*H values).
            inv_l = 1.0 / l_ref[...]                                  # (H, TQ, 1)
            inv_full = jnp.concatenate(
                [jnp.broadcast_to(inv_l[h], (tq, head_dim))
                 for h in range(num_heads)], axis=-1)                 # (TQ, D)
            # Normalization fused into the single lane-dense output store.
            o_ref[0] = (acc_ref[...] * inv_full).astype(o_ref.dtype)

    return kernel


def flash_mha(q, k, v, num_heads, *, tq=256, tkv=512):
    """q: (B, Nq, D), k/v: (B, Nk, D), D = num_heads*Dh -> (B, Nq, D).

    No softmax scale is applied here (fold 1/sqrt(Dh) into q or its projection).
    """
    B, Nq, D = q.shape
    Nk = k.shape[1]
    Dh = D // num_heads
    TQ = min(tq, Nq)
    TKV = min(tkv, Nk)
    needs_kv_mask = (Nk % TKV) != 0
    grid = (B, pl.cdiv(Nq, TQ), pl.cdiv(Nk, TKV))
    itemsize = q.dtype.itemsize
    cost = pl.CostEstimate(
        flops=4 * B * Nq * Nk * D,                    # QK^T + PV across all heads
        transcendentals=B * num_heads * Nq * Nk,      # exp
        # K/V are re-streamed once per q tile.
        bytes_accessed=(2 * B * Nq * D + 2 * B * pl.cdiv(Nq, TQ) * Nk * D) * itemsize,
    )
    return pl.pallas_call(
        _make_flash_kernel(num_heads, Dh, Nk, TKV, needs_kv_mask),
        out_shape=jax.ShapeDtypeStruct((B, Nq, D), q.dtype),
        grid=grid,
        in_specs=[
            pl.BlockSpec((1, TQ, D), lambda b, qi, ki: (b, qi, 0)),
            pl.BlockSpec((1, TKV, D), lambda b, qi, ki: (b, ki, 0)),
            pl.BlockSpec((1, TKV, D), lambda b, qi, ki: (b, ki, 0)),
        ],
        out_specs=pl.BlockSpec((1, TQ, D), lambda b, qi, ki: (b, qi, 0)),
        scratch_shapes=[
            pltpu.VMEM((num_heads, TQ, 1), jnp.float32),   # running max m
            pltpu.VMEM((num_heads, TQ, 1), jnp.float32),   # running sum l
            pltpu.VMEM((TQ, D), jnp.float32),              # output accumulator
        ],
        compiler_params=pltpu.CompilerParams(
            # B and Nq/TQ are "parallel" -> shardable across v7x's 2 TensorCores.
            dimension_semantics=("parallel", "parallel", "arbitrary"),
            vmem_limit_bytes=_VMEM_LIMIT,
        ),
        cost_estimate=cost,
    )(q, k, v)


# ---------------------------------------------------------------------------
# Module: Attention (parameters + forward), mirroring the PyTorch class
# ---------------------------------------------------------------------------
class Attention:
    def __init__(self, embedding_dim, num_heads, downsample_rate=1, key=None):
        self.embedding_dim = embedding_dim
        self.internal_dim = embedding_dim // downsample_rate
        self.num_heads = num_heads
        assert self.internal_dim % num_heads == 0, "num_heads must divide embedding_dim."

        if key is None:
            key = jax.random.PRNGKey(0)
        keys = jax.random.split(key, 8)

        def init_linear(kw, kb, fan_in, fan_out):
            # Mimics nn.Linear default init (uniform +/- 1/sqrt(fan_in)).
            bound = 1.0 / math.sqrt(fan_in)
            w = jax.random.uniform(kw, (fan_in, fan_out), jnp.float32, -bound, bound)
            b = jax.random.uniform(kb, (fan_out,), jnp.float32, -bound, bound)
            return w, b

        E, D = embedding_dim, self.internal_dim
        self.q_w, self.q_b = init_linear(keys[0], keys[1], E, D)
        self.k_w, self.k_b = init_linear(keys[2], keys[3], E, D)
        self.v_w, self.v_b = init_linear(keys[4], keys[5], E, D)
        self.o_w, self.o_b = init_linear(keys[6], keys[7], D, E)

    def __call__(self, q, k, v):
        B, Nq, E = q.shape
        Nk = k.shape[1]
        D = self.internal_dim
        Dh = D // self.num_heads
        scale = 1.0 / math.sqrt(Dh)

        # Fold the softmax scale into the q projection so the flash kernel never
        # multiplies q by the scale per KV step.
        qw, qb = self.q_w * scale, self.q_b * scale

        if (q is k) and (k is v):
            # Single source tensor: one fused QKV projection (one pass over the
            # activations in HBM instead of three).
            w = jnp.concatenate([qw, self.k_w, self.v_w], axis=1)
            bb = jnp.concatenate([qb, self.k_b, self.v_b], axis=0)
            fused = linear(q.reshape(B * Nq, E), w, bb)
            qp = fused[:, :D].reshape(B, Nq, D)
            kp = fused[:, D:2 * D].reshape(B, Nk, D)
            vp = fused[:, 2 * D:].reshape(B, Nk, D)
        elif k is v:
            # SAM cross-attention usually projects k and v from the same tensor.
            qp = linear(q.reshape(B * Nq, E), qw, qb).reshape(B, Nq, D)
            w = jnp.concatenate([self.k_w, self.v_w], axis=1)
            bb = jnp.concatenate([self.k_b, self.v_b], axis=0)
            fused = linear(k.reshape(B * Nk, E), w, bb)
            kp = fused[:, :D].reshape(B, Nk, D)
            vp = fused[:, D:].reshape(B, Nk, D)
        else:
            qp = linear(q.reshape(B * Nq, E), qw, qb).reshape(B, Nq, D)
            kp = linear(k.reshape(B * Nk, E), self.k_w, self.k_b).reshape(B, Nk, D)
            vp = linear(v.reshape(B * Nk, E), self.v_w, self.v_b).reshape(B, Nk, D)

        # Flash attention over the packed (B, N, H*Dh) layout; heads are sliced
        # inside the kernel -> no separate_heads/recombine_heads HBM transposes.
        o = flash_mha(qp, kp, vp, self.num_heads)

        # Output projection.
        return linear(o.reshape(B * Nq, D), self.o_w, self.o_b).reshape(B, Nq, E)


# ---------------------------------------------------------------------------
# Pure-JAX references for sanity checks
# ---------------------------------------------------------------------------
def reference_forward(mod, q, k, v):
    qp = q @ mod.q_w + mod.q_b
    kp = k @ mod.k_w + mod.k_b
    vp = v @ mod.v_w + mod.v_b
    B, Nq, D = qp.shape
    H = mod.num_heads
    Dh = D // H
    qh = jnp.transpose(qp.reshape(B, Nq, H, Dh), (0, 2, 1, 3))
    kh = jnp.transpose(kp.reshape(B, -1, H, Dh), (0, 2, 1, 3))
    vh = jnp.transpose(vp.reshape(B, -1, H, Dh), (0, 2, 1, 3))
    attn = jnp.einsum("bhqd,bhkd->bhqk", qh, kh) / math.sqrt(Dh)
    attn = jax.nn.softmax(attn, axis=-1)
    oh = jnp.einsum("bhqk,bhkd->bhqd", attn, vh)
    o = jnp.transpose(oh, (0, 2, 1, 3)).reshape(B, Nq, D)
    return o @ mod.o_w + mod.o_b


def reference_mha_unscaled(q, k, v, num_heads):
    B, Nq, D = q.shape
    Nk = k.shape[1]
    Dh = D // num_heads
    qh = jnp.transpose(q.reshape(B, Nq, num_heads, Dh), (0, 2, 1, 3))
    kh = jnp.transpose(k.reshape(B, Nk, num_heads, Dh), (0, 2, 1, 3))
    vh = jnp.transpose(v.reshape(B, Nk, num_heads, Dh), (0, 2, 1, 3))
    attn = jax.nn.softmax(jnp.einsum("bhqd,bhkd->bhqk", qh, kh), axis=-1)
    oh = jnp.einsum("bhqk,bhkd->bhqd", attn, vh)
    return jnp.transpose(oh, (0, 2, 1, 3)).reshape(B, Nq, D)


if __name__ == "__main__":
    # Small shapes consistent with the module's forward:
    #   batch=2, seq=8 tokens, embedding_dim=32, num_heads=4, downsample_rate=1
    B, N, E = 2, 8, 32
    H, DS = 4, 1

    key = jax.random.PRNGKey(0)
    kq, kk, kv, kparams = jax.random.split(key, 4)
    q = jax.random.normal(kq, (B, N, E), jnp.float32)
    k = jax.random.normal(kk, (B, N, E), jnp.float32)
    v = jax.random.normal(kv, (B, N, E), jnp.float32)

    mod = Attention(embedding_dim=E, num_heads=H, downsample_rate=DS, key=kparams)

    out = mod(q, k, v)
    out = jax.block_until_ready(out)

    ref = reference_forward(mod, q, k, v)
    assert out.shape == (B, N, E), out.shape
    # Exact reciprocal in the epilogue -> tight tolerance.
    assert jnp.allclose(out, ref, atol=1e-4, rtol=1e-4), float(
        jnp.max(jnp.abs(out - ref)))

    # Secondary check: exercise the masked last-KV-tile path (Nk % TKV != 0).
    B2, Nq2, Nk2, D2, H2 = 1, 8, 24, 32, 4
    k2q, k2k, k2v = jax.random.split(jax.random.PRNGKey(1), 3)
    q2 = jax.random.normal(k2q, (B2, Nq2, D2), jnp.float32)
    k2 = jax.random.normal(k2k, (B2, Nk2, D2), jnp.float32)
    v2 = jax.random.normal(k2v, (B2, Nk2, D2), jnp.float32)
    o2 = jax.block_until_ready(flash_mha(q2, k2, v2, H2, tq=8, tkv=16))
    ref2 = reference_mha_unscaled(q2, k2, v2, H2)
    assert jnp.allclose(o2, ref2, atol=1e-4, rtol=1e-4), float(
        jnp.max(jnp.abs(o2 - ref2)))

    print("KERNEL_OK")
</pallas_src>

<mosaic_0001>
module attributes {stable_mosaic.version = 11 : i64} {
  func.func @_linear_kernel(%arg0: i32, %arg1: i32, %arg2: i32, %arg3: memref<16x32xf32, #tpu.memory_space<vmem>>, %arg4: memref<32x32xf32, #tpu.memory_space<vmem>>, %arg5: memref<1x32xf32, #tpu.memory_space<vmem>>, %arg6: memref<16x32xf32, #tpu.memory_space<vmem>>, %arg7: memref<16x32xf32, #tpu.memory_space<vmem>>) attributes {dimension_semantics = [#tpu.dimension_semantics<parallel>, #tpu.dimension_semantics<parallel>, #tpu.dimension_semantics<arbitrary>], iteration_bounds = array<i64: 1, 1, 1>, scalar_prefetch = 0 : i64, scratch_operands = 1 : i64, tpu.core_type = #tpu.core_type<tc>, window_params = [{transform_indices = @transform_0, window_bounds = array<i64: 16, 32>}, {transform_indices = @transform_1, window_bounds = array<i64: 32, 32>}, {transform_indices = @transform_2, window_bounds = array<i64: 1, 32>}, {transform_indices = @transform_3, window_bounds = array<i64: 16, 32>}]} {
    %c0_i32 = arith.constant 0 : i32
    %0 = arith.cmpi eq, %arg2, %c0_i32 : i32
    %1 = arith.extui %0 : i1 to i32
    %c0_i32_0 = arith.constant 0 : i32
    %2 = arith.cmpi ne, %1, %c0_i32_0 : i32
    scf.if %2 {
      %cst_10 = arith.constant 0.000000e+00 : f32
      %12 = vector.broadcast %cst_10 : f32 to vector<16x32xf32>
      %c0_11 = arith.constant 0 : index
      %c0_12 = arith.constant 0 : index
      %13 = vector.load %arg7[%c0_11, %c0_12] : memref<16x32xf32, #tpu.memory_space<vmem>>, vector<16x32xf32>
      tpu.vector_store %arg7[%c0_11, %c0_12], %12 {strides = array<i32>} : memref<16x32xf32, #tpu.memory_space<vmem>>, vector<16x32xf32>,
    } else {
    }
    %c0 = arith.constant 0 : index
    %c0_1 = arith.constant 0 : index
    %3 = vector.load %arg7[%c0, %c0_1] : memref<16x32xf32, #tpu.memory_space<vmem>>, vector<16x32xf32>
    %c0_2 = arith.constant 0 : index
    %c0_3 = arith.constant 0 : index
    %4 = vector.load %arg3[%c0_2, %c0_3] : memref<16x32xf32, #tpu.memory_space<vmem>>, vector<16x32xf32>
    %c0_4 = arith.constant 0 : index
    %c0_5 = arith.constant 0 : index
    %5 = vector.load %arg4[%c0_4, %c0_5] : memref<32x32xf32, #tpu.memory_space<vmem>>, vector<32x32xf32>
    %cst = arith.constant dense<0.000000e+00> : vector<16x32xf32>
    %6 = tpu.matmul %4, %5, %cst {dimension_numbers = #tpu.dot_dimension_numbers<[1], [0], [0], [1], [0, 0, 1, 1], [], []>} : vector<16x32xf32>, vector<32x32xf32>, vector<16x32xf32> -> vector<16x32xf32>
    %7 = arith.addf %3, %6 : vector<16x32xf32>
    %c0_6 = arith.constant 0 : index
    %c0_7 = arith.constant 0 : index
    %8 = vector.load %arg7[%c0_6, %c0_7] : memref<16x32xf32, #tpu.memory_space<vmem>>, vector<16x32xf32>
    tpu.vector_store %arg7[%c0_6, %c0_7], %7 {strides = array<i32>} : memref<16x32xf32, #tpu.memory_space<vmem>>, vector<16x32xf32>,
    %c0_i32_8 = arith.constant 0 : i32
    %9 = arith.cmpi eq, %arg2, %c0_i32_8 : i32
    %10 = arith.extui %9 : i1 to i32
    %c0_i32_9 = arith.constant 0 : i32
    %11 = arith.cmpi ne, %10, %c0_i32_9 : i32
    scf.if %11 {
      %c0_10 = arith.constant 0 : index
      %c0_11 = arith.constant 0 : index
      %12 = vector.load %arg7[%c0_10, %c0_11] : memref<16x32xf32, #tpu.memory_space<vmem>>, vector<16x32xf32>
      %c0_12 = arith.constant 0 : index
      %c0_13 = arith.constant 0 : index
      %13 = vector.load %arg5[%c0_12, %c0_13] : memref<1x32xf32, #tpu.memory_space<vmem>>, vector<1x32xf32>
      %14 = vector.broadcast %13 : vector<1x32xf32> to vector<16x32xf32>
      %15 = arith.addf %12, %14 : vector<16x32xf32>
      %c0_14 = arith.constant 0 : index
      %c0_15 = arith.constant 0 : index
      %16 = vector.load %arg6[%c0_14, %c0_15] : memref<16x32xf32, #tpu.memory_space<vmem>>, vector<16x32xf32>
      tpu.vector_store %arg6[%c0_14, %c0_15], %15 {strides = array<i32>} : memref<16x32xf32, #tpu.memory_space<vmem>>, vector<16x32xf32>,
    } else {
    }
    return
  }
  func.func @transform_0(%arg0: i32, %arg1: i32, %arg2: i32) -> (i32, i32) {
    %c0_i32 = arith.constant 0 : i32
    return %arg0, %arg2 : i32, i32
  }
  func.func @transform_1(%arg0: i32, %arg1: i32, %arg2: i32) -> (i32, i32) {
    %c0_i32 = arith.constant 0 : i32
    return %arg2, %arg1 : i32, i32
  }
  func.func @transform_2(%arg0: i32, %arg1: i32, %arg2: i32) -> (i32, i32) {
    %c0_i32 = arith.constant 0 : i32
    %c0_i32_0 = arith.constant 0 : i32
    return %c0_i32, %arg1 : i32, i32
  }
  func.func @transform_3(%arg0: i32, %arg1: i32, %arg2: i32) -> (i32, i32) {
    %c0_i32 = arith.constant 0 : i32
    return %arg0, %arg1 : i32, i32
  }
}

</mosaic_0001>

<bundles_post_ra>
// kernel: tpu_custom_call.1
= control target key start
LH: loop header
LB: loop body
LE: loop exit
PB: predicated region body
PF: predicated region fallthrough
CT: control target
= control target key end

     0   :  { %8 = vsyncpa [#allocation4], 0  ;;  %s275_s0 = inlined_call_operand.hbm [shape: f32[16,32], index: 0, kind: input, shape index: {}]   ;;  %s276_s1 = inlined_call_operand.hbm [shape: f32[32,32], index: 1, kind: input, shape index: {}]   ;;  %s277_s2 = inlined_call_operand.vmem [shape: f32[1,32], index: 2, kind: input, shape index: {}]   ;;  %s278_s3 = inlined_call_operand.hbm [shape: f32[16,32], index: 3, kind: output, shape index: {}]  }
   0x1   :  { %9 = vsyncpa [#allocation7], 0 }
   0x2   :  { %10 = vsyncpa [#allocation5], 0  ;;  %s15_s14 = sshll.u32 %s275_s0, 4  ;;  %s220_s15 = smov [#allocation3]   ;;  %s16_s14 = int_to_ptr.hbm [resolvable:$true] %s15_s14 }
   0x3   :  { %s17_s16 = sshll.u32 %s220_s15, 4  ;;  %s28_s19 = sshll.u32 %s276_s1, 4  ;;  %s18_s16 = int_to_ptr.vmem [resolvable:$true] %s17_s16  ;;  %s29_s19 = int_to_ptr.hbm [resolvable:$true] %s28_s19 }
   0x4   :  { %s221_s20 = smov 128   ;;  %s222_s21 = smov 8  }
   0x5   :  { %23 = dma.hbm_to_vmem [thread:$0]  %s16_s14, 256, %s18_s16, [#allocation4], %s221_s20, %s221_s20, %s222_s21  }
   0x6   :  { %s223_s22 = smov [#allocation6]  }
   0x7   :  { %s30_s23 = sshll.u32 %s223_s22, 4  ;;  %s31_s23 = int_to_ptr.vmem [resolvable:$true] %s30_s23 }
   0x8   :  { %36 = dma.hbm_to_vmem [thread:$0]  %s29_s19, 512, %s31_s23, [#allocation7], %s221_s20, %s221_s20, %s222_s21  }
   0x9   :  { %214 = dma.done.wait [#allocation4], 256  }
   0xa   :  { %215 = vsyncadd [#allocation4], 4294967040 }
   0xb   :  { %216 = dma.done.wait [#allocation7], 512  }
   0xc   :  { %217 = vsyncadd [#allocation7], 4294966784  ;;  %vm51_vm0 = vcmask 261120   ;;  %v224_v0 = vmov 0.0   ;;  %v61_v1 = vld [vmem:[#allocation6 + $0x18] sm:$0xff]  ;;  %v60_v2 = vld [vmem:[#allocation6 + $0x10] sm:$0xff] }
   0xd   :  { %52 = vst.msk [vmem:[#allocation2] sm:$0xff] %vm51_vm0, %v224_v0  ;;  %81 = vmatpush.msra.mxu0 %v61_v1  ;;  %131 = vmatpush.msra.mxu1 %v61_v1  ;;  %v59_v3 = vld [vmem:[#allocation6 + $0x8] sm:$0xff]  ;;  %v58_v4 = vld [vmem:[#allocation6] sm:$0xff]  ;;  %v56_v5 = vld [vmem:[#allocation3] sm:$0xff]  ;;  %s225_s24 = smov [#allocation8]   ;;  %s115_s28 = sshll.u32 %s278_s3, 4  ;;  %s116_s28 = int_to_ptr.hbm [resolvable:$true] %s115_s28 }
   0xe   :  { %53 = vst.msk [vmem:[#allocation2 + $0x8] sm:$0xff] %vm51_vm0, %v224_v0  ;;  %v57_v6 = vld [vmem:[#allocation3 + $0x8] sm:$0xff]  ;;  %v141_v13 = vld [vmem:[%s277_s2] ss:$0 sm:$0xff]  ;;  %s113_s25 = sshll.u32 %s225_s24, 4  ;;  %s114_s25 = int_to_ptr.vmem [resolvable:$true] %s113_s25 }
   0xf   :  { %82 = vmatpush.msra.mxu0 %v60_v2  ;;  %132 = vmatpush.msra.mxu1 %v60_v2 }
  0x11   :  { %83 = vmatpush.msra.mxu0 %v59_v3  ;;  %133 = vmatpush.msra.mxu1 %v59_v3 }
  0x13   :  { %84 = vmatpush.msra.mxu0 %v58_v4  ;;  %134 = vmatpush.msra.mxu1 %v58_v4 }
  0x14   :  { %129 = vmatmul.msk.f32.vlgmr.msra.gmra.mxu0 %vm51_vm0, %v56_v5  ;;  %130 = vmatmul.msk.f32.vlgmr.msra.gmra.mxu1 %vm51_vm0, %v57_v6  ;;  %v54_v7 = vld [vmem:[#allocation2] sm:$0xff] }
  0x15   :  { %v55_v8 = vld [vmem:[#allocation2 + $0x8] sm:$0xff] }
  0x91   :  { %v86_v9 = vpop.f32.mrf.mxu0  ;;  %v89_v10 = vpop.f32.mrf.mxu1 }
  0x92   :  { %v92_v11 = vadd.f32 %v86_v9, %v54_v7  ;;  %v93_v12 = vadd.f32 %v89_v10, %v55_v8 }
  0x94   :  { %94 = vst.msk [vmem:[#allocation2] sm:$0xff] %vm51_vm0, %v92_v11 }
  0x95   :  { %95 = vst.msk [vmem:[#allocation2 + $0x8] sm:$0xff] %vm51_vm0, %v93_v12 }
  0x9b   :  { %v99_v14 = vld [vmem:[#allocation2] sm:$0xff] }
  0x9c   :  { %v100_v15 = vld [vmem:[#allocation2 + $0x8] sm:$0xff]  ;;  %v105_v16 = vadd.f32 %v141_v13, %v99_v14 }
  0x9d   :  { %v106_v17 = vadd.f32 %v141_v13, %v100_v15 }
  0x9e   :  { %107 = vst.msk [vmem:[#allocation8] sm:$0xff] %vm51_vm0, %v105_v16 }
  0x9f   :  { %108 = vst.msk [vmem:[#allocation8 + $0x8] sm:$0xff] %vm51_vm0, %v106_v17 }
  0xa0   :  { %121 = dma.vmem_to_hbm [thread:$0]  %s114_s25, 256, %s116_s28, [#allocation5], %s221_s20, %s221_s20, %s222_s21  }
  0xa1   :  { %218 = dma.done.wait [#allocation5], 256  }
  0xa2   :  { %219 = vsyncadd [#allocation5], 4294967040 }
  0xa3   :  { %126 = vsyncpa [#allocation4], 1 }
  0xa4   :  { %127 = vsyncpa [#allocation7], 1 }
  0xa5   :  { %128 = vsyncpa [#allocation5], 1 }

</bundles_post_ra>
